<compile_context>
chip_gen: v6e
topology: v6e:2x2x1
jax: 0.10.0
libtpu: 0.0.40
codegen_flags: <defaults>
</compile_context>

<pallas_src>
import functools
import math

import numpy as np
import jax
import jax.numpy as jnp
from jax.experimental import pallas as pl
from jax.experimental.pallas import tpu as pltpu

IN_EPS = 1e-5          # nn.InstanceNorm2d default eps
LRELU_SLOPE = 0.01     # nn.LeakyReLU() default negative_slope


def _round_up(x, m):
    return ((x + m - 1) // m) * m


# ----------------------------- Pallas kernel -----------------------------

def _conv_in_lrelu_kernel(x_ref, w_ref, mask_ref, out_ref, *, wp, m_pix, cin_p,
                          inv_count, use_in, use_relu, use_concat):
    # x_ref:    (Cin_p, L)        flattened zero-padded image of one sample (bf16)
    # w_ref:    (Cout_t, 9*Cin_p) conv-weight tile, tap-major along K (bf16)
    # mask_ref: (1, m_pix)        1.0 for valid output columns, 0.0 for wrap/pad garbage
    # out_ref:  (Cout_t, m_pix)   lane-dense f32 output slab
    tap_offsets = [ky * wp + kx for ky in range(3) for kx in range(3)]  # static

    if use_concat:
        # small 9*Cin_p: single big-K MXU matmul; staging temp is small (bf16)
        patches = jnp.concatenate(
            [x_ref[:, s:s + m_pix] for s in tap_offsets], axis=0)       # (9*Cin_p, m_pix)
        y = jnp.dot(w_ref[...], patches, preferred_element_type=jnp.float32)
    else:
        # large Cin: accumulate 9 matmuls, staging bounded to ~1x the input tile
        y = jnp.zeros((out_ref.shape[0], m_pix), jnp.float32)
        for t, s in enumerate(tap_offsets):
            y = y + jnp.dot(w_ref[:, t * cin_p:(t + 1) * cin_p],
                            x_ref[:, s:s + m_pix],
                            preferred_element_type=jnp.float32)

    if use_in:
        # InstanceNorm2d (affine=False): per-channel mean/var over valid spatial positions
        # of this sample.  Two-pass (mean-subtracted) variance in f32 for accuracy.
        mask = mask_ref[...]                                            # (1, m_pix)
        mean = jnp.sum(y * mask, axis=1, keepdims=True) * inv_count     # (Cout_t, 1)
        centered = (y - mean) * mask
        var = jnp.sum(centered * centered, axis=1, keepdims=True) * inv_count
        inv_std = jax.lax.rsqrt(var + IN_EPS)
        y = (y - mean) * inv_std
    if use_relu:
        y = jnp.where(y >= 0, y, LRELU_SLOPE * y)                       # LeakyReLU(0.01)
    out_ref[...] = y.astype(out_ref.dtype)


# ----------------------------- wrapper -----------------------------

def _pick_vmem_limit(required_bytes):
    try:
        cap = pltpu.get_tpu_info().vmem_capacity_bytes
    except Exception:
        cap = 64 * 1024 * 1024          # conservative fallback (v7x per-core VMEM)
    want = max(2 * required_bytes, 32 * 1024 * 1024)
    return int(min(want, int(cap * 0.85)))   # leave headroom for compiler scratch


def basic_conv_in(x_nchw, weight, *, use_in=True, use_relu=True):
    """BasicConv_IN forward (2D, deconv=False, kernel_size=3, stride=1, padding=1).

    x_nchw: (N, Cin, H, W) float32 (PyTorch layout)
    weight: (Cout, Cin, 3, 3) float32 (PyTorch layout, conv has no bias)
    returns (N, Cout, H, W) float32
    """
    n, cin, h, w = x_nchw.shape
    cout = weight.shape[0]
    hp, wp = h + 2, w + 2

    cin_p = _round_up(cin, 16)              # bf16 sublane packing
    cout_p = _round_up(cout, 16)
    if cout_p > 256:
        tco = 256                           # match MXU M dimension, bound output block
        cout_p = _round_up(cout_p, tco)
    else:
        tco = cout_p
    n_co = cout_p // tco

    m_valid = h * wp                        # flattened output length (incl. 2 wrap cols/row)
    m_pix = _round_up(m_valid, 128)         # lane-dense output width
    l_need = 2 * wp + 2 + m_pix             # last tap offset + m_pix
    extra_rows = max(0, -(-(l_need - hp * wp) // wp))   # extra zero rows to cover the tail
    l_total = (hp + extra_rows) * wp

    # ONE fused pad: channel pad to Cin_p, 1px conv border, extra bottom rows for the lane
    # tail — all in a single pass, cast to bf16 at the same time.  Then flatten per (n,c).
    xf = jnp.pad(x_nchw.astype(jnp.bfloat16),
                 ((0, 0), (0, cin_p - cin), (1, 1 + extra_rows), (1, 1)))
    xf = xf.reshape(n, cin_p, l_total)

    # weight -> (Cout_p, 9*Cin_p), tap-major (ky, kx, cin) along K, bf16
    wmat = jnp.pad(weight.astype(jnp.bfloat16),
                   ((0, cout_p - cout), (0, cin_p - cin), (0, 0), (0, 0)))
    wmat = jnp.transpose(wmat, (0, 2, 3, 1)).reshape(cout_p, 9 * cin_p)

    # validity mask over flattened output columns (drops wrap columns + lane padding)
    col = jnp.arange(m_pix)
    mask = ((col < m_valid) & ((col % wp) < w)).astype(jnp.float32).reshape(1, m_pix)

    use_concat = (9 * cin_p) <= 512         # keep single big-K matmul only when K is small

    # VMEM budget estimate (double-buffered I/O blocks + in-kernel staging)
    bytes_in = cin_p * l_total * 2
    bytes_w = tco * 9 * cin_p * 2
    bytes_mask = m_pix * 4
    bytes_out = tco * m_pix * 4
    bytes_stage = (9 * cin_p * m_pix * 2 + bytes_out) if use_concat \
        else (cin_p * m_pix * 2 + 2 * bytes_out)
    required = 2 * (bytes_in + bytes_w + bytes_mask + bytes_out) + bytes_stage
    vmem_limit = _pick_vmem_limit(required)

    kernel = functools.partial(
        _conv_in_lrelu_kernel, wp=wp, m_pix=m_pix, cin_p=cin_p,
        inv_count=1.0 / float(h * w),
        use_in=use_in, use_relu=use_relu, use_concat=use_concat)

    out = pl.pallas_call(
        kernel,
        out_shape=jax.ShapeDtypeStruct((n, cout_p, m_pix), jnp.float32),
        grid_spec=pltpu.PrefetchScalarGridSpec(
            num_scalar_prefetch=0,
            grid=(n, n_co),                                           # (sample, Cout tile)
            in_specs=[
                pl.BlockSpec((None, cin_p, l_total), lambda i, j: (i, 0, 0)),  # per-sample image
                pl.BlockSpec((tco, 9 * cin_p), lambda i, j: (j, 0)),           # weight tile
                pl.BlockSpec((1, m_pix), lambda i, j: (0, 0)),                 # resident mask
            ],
            out_specs=pl.BlockSpec((None, tco, m_pix), lambda i, j: (i, j, 0)),
        ),
        compiler_params=pltpu.CompilerParams(
            dimension_semantics=("parallel", "parallel"),
            vmem_limit_bytes=vmem_limit,
        ),
    )(xf, wmat, mask)

    # un-flatten: (Cout_p, H*Wp) -> drop channel pad -> (Cout, H, Wp) -> drop wrap columns
    out = out[:, :cout, :m_valid].reshape(n, cout, h, wp)[:, :, :, :w]
    return out


# ----------------------------- pure-JAX reference -----------------------------

def basic_conv_in_ref(x_nchw, weight, *, use_in=True, use_relu=True):
    y = jax.lax.conv_general_dilated(
        x_nchw, weight, window_strides=(1, 1), padding=((1, 1), (1, 1)),
        dimension_numbers=("NCHW", "OIHW", "NCHW"),
        precision=jax.lax.Precision.HIGHEST)
    if use_in:
        mean = jnp.mean(y, axis=(2, 3), keepdims=True)
        var = jnp.var(y, axis=(2, 3), keepdims=True)      # biased, like InstanceNorm
        y = (y - mean) / jnp.sqrt(var + IN_EPS)
    if use_relu:
        y = jnp.where(y >= 0, y, LRELU_SLOPE * y)
    return y


# ----------------------------- main -----------------------------

if __name__ == "__main__":
    key = jax.random.PRNGKey(0)
    n, cin, cout, h, w = 2, 4, 8, 16, 16

    kx, kw = jax.random.split(key)
    x = jax.random.normal(kx, (n, cin, h, w), jnp.float32)          # PyTorch NCHW layout
    weight = jax.random.normal(kw, (cout, cin, 3, 3), jnp.float32) * (1.0 / math.sqrt(9.0 * cin))

    out = jax.block_until_ready(basic_conv_in(x, weight))

    # tight check: reference fed the same bf16-rounded operands (isolates kernel math)
    x_bf = x.astype(jnp.bfloat16).astype(jnp.float32)
    w_bf = weight.astype(jnp.bfloat16).astype(jnp.float32)
    ref_bf = basic_conv_in_ref(x_bf, w_bf)
    np.testing.assert_allclose(np.asarray(out), np.asarray(ref_bf), rtol=5e-3, atol=5e-3)

    # loose check: full-f32 module semantics (bf16 MXU operands => ~1% expected deviation)
    ref = basic_conv_in_ref(x, weight)
    assert out.shape == ref.shape, (out.shape, ref.shape)
    np.testing.assert_allclose(np.asarray(out), np.asarray(ref), rtol=5e-2, atol=5e-2)

    print("KERNEL_OK")
</pallas_src>

<mosaic_0001>
module attributes {stable_mosaic.version = 11 : i64} {
  func.func @_conv_in_lrelu_kernel(%arg0: i32, %arg1: i32, %arg2: memref<1x16x432xbf16, #tpu.memory_space<vmem>>, %arg3: memref<16x144xbf16, #tpu.memory_space<vmem>>, %arg4: memref<1x384xf32, #tpu.memory_space<vmem>>, %arg5: memref<1x16x384xf32, #tpu.memory_space<vmem>>) attributes {dimension_semantics = [#tpu.dimension_semantics<parallel>, #tpu.dimension_semantics<parallel>], iteration_bounds = array<i64: 2, 1>, scalar_prefetch = 0 : i64, scratch_operands = 0 : i64, tpu.core_type = #tpu.core_type<tc>, window_params = [{transform_indices = @transform_0, window_bounds = array<i64: 1, 16, 432>}, {transform_indices = @transform_1, window_bounds = array<i64: 16, 144>}, {pipeline_mode = #tpu.pipeline_mode<synchronous>, transform_indices = @transform_2, window_bounds = array<i64: 1, 384>}, {transform_indices = @transform_3, window_bounds = array<i64: 1, 16, 384>}]} {
    %c0 = arith.constant 0 : index
    %c0_0 = arith.constant 0 : index
    %c0_1 = arith.constant 0 : index
    %0 = vector.load %arg2[%c0, %c0_0, %c0_1] : memref<1x16x432xbf16, #tpu.memory_space<vmem>>, vector<1x16x384xbf16>
    %1 = vector.shape_cast %0 : vector<1x16x384xbf16> to vector<16x384xbf16>
    %c0_2 = arith.constant 0 : index
    %c0_3 = arith.constant 0 : index
    %c1 = arith.constant 1 : index
    %2 = vector.load %arg2[%c0_2, %c0_3, %c1] : memref<1x16x432xbf16, #tpu.memory_space<vmem>>, vector<1x16x384xbf16>
    %3 = vector.shape_cast %2 : vector<1x16x384xbf16> to vector<16x384xbf16>
    %c0_4 = arith.constant 0 : index
    %c0_5 = arith.constant 0 : index
    %c2 = arith.constant 2 : index
    %4 = vector.load %arg2[%c0_4, %c0_5, %c2] : memref<1x16x432xbf16, #tpu.memory_space<vmem>>, vector<1x16x384xbf16>
    %5 = vector.shape_cast %4 : vector<1x16x384xbf16> to vector<16x384xbf16>
    %c0_6 = arith.constant 0 : index
    %c0_7 = arith.constant 0 : index
    %c18 = arith.constant 18 : index
    %6 = vector.load %arg2[%c0_6, %c0_7, %c18] : memref<1x16x432xbf16, #tpu.memory_space<vmem>>, vector<1x16x384xbf16>
    %7 = vector.shape_cast %6 : vector<1x16x384xbf16> to vector<16x384xbf16>
    %c0_8 = arith.constant 0 : index
    %c0_9 = arith.constant 0 : index
    %c19 = arith.constant 19 : index
    %8 = vector.load %arg2[%c0_8, %c0_9, %c19] : memref<1x16x432xbf16, #tpu.memory_space<vmem>>, vector<1x16x384xbf16>
    %9 = vector.shape_cast %8 : vector<1x16x384xbf16> to vector<16x384xbf16>
    %c0_10 = arith.constant 0 : index
    %c0_11 = arith.constant 0 : index
    %c20 = arith.constant 20 : index
    %10 = vector.load %arg2[%c0_10, %c0_11, %c20] : memref<1x16x432xbf16, #tpu.memory_space<vmem>>, vector<1x16x384xbf16>
    %11 = vector.shape_cast %10 : vector<1x16x384xbf16> to vector<16x384xbf16>
    %c0_12 = arith.constant 0 : index
    %c0_13 = arith.constant 0 : index
    %c36 = arith.constant 36 : index
    %12 = vector.load %arg2[%c0_12, %c0_13, %c36] : memref<1x16x432xbf16, #tpu.memory_space<vmem>>, vector<1x16x384xbf16>
    %13 = vector.shape_cast %12 : vector<1x16x384xbf16> to vector<16x384xbf16>
    %c0_14 = arith.constant 0 : index
    %c0_15 = arith.constant 0 : index
    %c37 = arith.constant 37 : index
    %14 = vector.load %arg2[%c0_14, %c0_15, %c37] : memref<1x16x432xbf16, #tpu.memory_space<vmem>>, vector<1x16x384xbf16>
    %15 = vector.shape_cast %14 : vector<1x16x384xbf16> to vector<16x384xbf16>
    %c0_16 = arith.constant 0 : index
    %c0_17 = arith.constant 0 : index
    %c38 = arith.constant 38 : index
    %16 = vector.load %arg2[%c0_16, %c0_17, %c38] : memref<1x16x432xbf16, #tpu.memory_space<vmem>>, vector<1x16x384xbf16>
    %17 = vector.shape_cast %16 : vector<1x16x384xbf16> to vector<16x384xbf16>
    %18 = tpu.concatenate %1, %3, %5, %7, %9, %11, %13, %15, %17 in 0 : vector<16x384xbf16>, vector<16x384xbf16>, vector<16x384xbf16>, vector<16x384xbf16>, vector<16x384xbf16>, vector<16x384xbf16>, vector<16x384xbf16>, vector<16x384xbf16>, vector<16x384xbf16> -> vector<144x384xbf16>
    %c0_18 = arith.constant 0 : index
    %c0_19 = arith.constant 0 : index
    %19 = vector.load %arg3[%c0_18, %c0_19] : memref<16x144xbf16, #tpu.memory_space<vmem>>, vector<16x144xbf16>
    %cst = arith.constant dense<0.000000e+00> : vector<16x384xf32>
    %20 = tpu.matmul %19, %18, %cst {dimension_numbers = #tpu.dot_dimension_numbers<[1], [0], [0], [1], [0, 0, 1, 1], [], []>} : vector<16x144xbf16>, vector<144x384xbf16>, vector<16x384xf32> -> vector<16x384xf32>
    %c0_20 = arith.constant 0 : index
    %c0_21 = arith.constant 0 : index
    %21 = vector.load %arg4[%c0_20, %c0_21] : memref<1x384xf32, #tpu.memory_space<vmem>>, vector<1x384xf32>
    %22 = vector.broadcast %21 : vector<1x384xf32> to vector<16x384xf32>
    %23 = arith.mulf %20, %22 : vector<16x384xf32>
    %cst_22 = arith.constant dense<0.000000e+00> : vector<16xf32>
    %24 = vector.multi_reduction <add>, %23, %cst_22 [1] : vector<16x384xf32> to vector<16xf32>
    %25 = vector.shape_cast %24 : vector<16xf32> to vector<16x1xf32>
    %cst_23 = arith.constant 3.906250e-03 : f32
    %26 = vector.broadcast %cst_23 : f32 to vector<16x1xf32>
    %27 = arith.mulf %25, %26 : vector<16x1xf32>
    %28 = vector.broadcast %27 : vector<16x1xf32> to vector<16x384xf32>
    %29 = arith.subf %20, %28 : vector<16x384xf32>
    %30 = vector.broadcast %21 : vector<1x384xf32> to vector<16x384xf32>
    %31 = arith.mulf %29, %30 : vector<16x384xf32>
    %32 = arith.mulf %31, %31 : vector<16x384xf32>
    %cst_24 = arith.constant dense<0.000000e+00> : vector<16xf32>
    %33 = vector.multi_reduction <add>, %32, %cst_24 [1] : vector<16x384xf32> to vector<16xf32>
    %34 = vector.shape_cast %33 : vector<16xf32> to vector<16x1xf32>
    %cst_25 = arith.constant 3.906250e-03 : f32
    %35 = vector.broadcast %cst_25 : f32 to vector<16x1xf32>
    %36 = arith.mulf %34, %35 : vector<16x1xf32>
    %cst_26 = arith.constant 9.99999974E-6 : f32
    %37 = vector.broadcast %cst_26 : f32 to vector<16x1xf32>
    %38 = arith.addf %36, %37 : vector<16x1xf32>
    %39 = math.rsqrt %38 : vector<16x1xf32>
    %40 = vector.broadcast %27 : vector<16x1xf32> to vector<16x384xf32>
    %41 = arith.subf %20, %40 : vector<16x384xf32>
    %42 = vector.broadcast %39 : vector<16x1xf32> to vector<16x384xf32>
    %43 = arith.mulf %41, %42 : vector<16x384xf32>
    %cst_27 = arith.constant 0.000000e+00 : f32
    %44 = vector.broadcast %cst_27 : f32 to vector<16x384xf32>
    %45 = arith.cmpf oge, %43, %44 : vector<16x384xf32>
    %cst_28 = arith.constant 0.00999999977 : f32
    %46 = vector.broadcast %cst_28 : f32 to vector<16x384xf32>
    %47 = arith.mulf %46, %43 : vector<16x384xf32>
    %48 = arith.select %45, %43, %47 : vector<16x384xi1>, vector<16x384xf32>
    %c0_29 = arith.constant 0 : index
    %c0_30 = arith.constant 0 : index
    %c0_31 = arith.constant 0 : index
    %49 = vector.load %arg5[%c0_29, %c0_30, %c0_31] : memref<1x16x384xf32, #tpu.memory_space<vmem>>, vector<1x16x384xf32>
    %50 = vector.shape_cast %49 : vector<1x16x384xf32> to vector<16x384xf32>
    %51 = vector.shape_cast %48 : vector<16x384xf32> to vector<1x16x384xf32>
    tpu.vector_store %arg5[%c0_29, %c0_30, %c0_31], %51 {strides = array<i32>} : memref<1x16x384xf32, #tpu.memory_space<vmem>>, vector<1x16x384xf32>,
    return
  }
  func.func @transform_0(%arg0: i32, %arg1: i32) -> (i32, i32, i32) {
    %c0_i32 = arith.constant 0 : i32
    %c0_i32_0 = arith.constant 0 : i32
    %c0_i32_1 = arith.constant 0 : i32
    return %arg0, %c0_i32, %c0_i32_0 : i32, i32, i32
  }
  func.func @transform_1(%arg0: i32, %arg1: i32) -> (i32, i32) {
    %c0_i32 = arith.constant 0 : i32
    %c0_i32_0 = arith.constant 0 : i32
    return %arg1, %c0_i32 : i32, i32
  }
  func.func @transform_2(%arg0: i32, %arg1: i32) -> (i32, i32) {
    %c0_i32 = arith.constant 0 : i32
    %c0_i32_0 = arith.constant 0 : i32
    %c0_i32_1 = arith.constant 0 : i32
    return %c0_i32, %c0_i32_0 : i32, i32
  }
  func.func @transform_3(%arg0: i32, %arg1: i32) -> (i32, i32, i32) {
    %c0_i32 = arith.constant 0 : i32
    %c0_i32_0 = arith.constant 0 : i32
    return %arg0, %arg1, %c0_i32 : i32, i32, i32
  }
}

</mosaic_0001>

<bundles_post_ra>
// kernel: tpu_custom_call.1
= control target key start
LH: loop header
LB: loop body
LE: loop exit
PB: predicated region body
PF: predicated region fallthrough
CT: control target
= control target key end

     0   :  { %8 = vsyncpa [#allocation3], 0  ;;  %s1240_s0 = inlined_call_operand.hbm [shape: bf16[2,16,432], index: 0, kind: input, shape index: {}]   ;;  %s1241_s1 = inlined_call_operand.hbm [shape: bf16[16,144], index: 1, kind: input, shape index: {}]   ;;  %s1242_s2 = inlined_call_operand.vmem [shape: f32[1,384], index: 2, kind: input, shape index: {}]   ;;  %s1243_s3 = inlined_call_operand.hbm [shape: f32[2,16,384], index: 3, kind: output, shape index: {}]  }
   0x1   :  { %10 = vsyncpa [#allocation3 + $0x1], 0 }
   0x2   :  { %11 = vsyncpa [#allocation6], 0 }
   0x3   :  { %12 = vsyncpa [#allocation4], 0 }
   0x4   :  { %14 = vsyncpa [#allocation4 + $0x1], 0  ;;  %s993_s12 = smov 0   ;;  %s995_s13 = smov 0  }
   0x5   :  { %s997_s14 = smov 0   ;;  %s999_s15 = smov 0  }
   0x6   :  { %s1001_s16 = smov 0   ;;  %s1003_s17 = smov 0  }
   0x7 LB: > { %s687_s18 = sadd.s32 4294967295, %s953_s17   ;;  %s688_s19 = sadd.s32 4294967294, %s953_s17   ;;  %s953_s17 = sphi %s1003_s17, %s20_s17   ;;  %s949_s16 = sphi %s1001_s16, %s1261_s16   ;;  %s945_s15 = sphi %s999_s15, %s1260_s15   ;;  %s941_s14 = sphi %s997_s14, %s1259_s14   ;;  %s937_s13 = sphi %s995_s13, %s1258_s13   ;;  %s933_s12 = sphi %s993_s12, %s1257_s12  }
   0x8   : > { %p52_p0 = scmp.ne.s32.totalorder %s937_s13, %s933_s12  ;;  %p1027_p1 = scmp.eq.s32.totalorder %s687_s18, 0 }
   0x9   : > { %p1031_p2 = scmp.eq.s32.totalorder %s687_s18, 1  ;;  %p131_p3 = scmp.eq.s32.totalorder %s688_s19, 1 }
   0xa   : > { %p1037_p4 = por %p1027_p1, %p52_p0  ;;  %p689_p5 = scmp.ge.s32.totalorder %s953_s17, 1 }
   0xb   : > { %p1042_p6 = por %p131_p3, %p52_p0  ;;  %p138_p7 = scmp.lt.s32.totalorder %s953_s17, 3 }
   0xc   : > { %s1247_s22 = scalar_select %p1037_p4, 1, 0 }
   0xd   : > { %s1248_s23 = scalar_select %p1042_p6, 1, 0 }
   0xe   : > { %p1047_p8 = pnand %p689_p5, %p138_p7  ;;  %s955_s25 = smov [#allocation5]  }
   0xf   : > { %s154_s26 = sshll.u32 %s955_s25, 4  ;;  %s32_s28 = sadd.s32 1, %s949_s16  ;;  %s155_s26 = int_to_ptr.vmem [resolvable:$true] %s154_s26 }
  0x10   : > { %p721_p9 = pneg %p1047_p8  ;;  %s826_s29 = scalar_lea.vmem %s155_s26, 256 }
  0x11   : > { %p827_p13 = scmp.ne.s32.totalorder %s155_s26, %s826_s29  ;;  %p834_p5 = scmp.lt.s32.totalorder %s155_s26, %s155_s26 }
  0x12   : > { %p1056_p11 = pnand %p721_p9, %p1027_p1  ;;  %p835_p7 = scmp.lt.s32.totalorder %s826_s29, %s826_s29 }
  0x14   : > { %p817_p12 = pneg %p1056_p11  ;;  %p836_p6 = por %p835_p7, %p834_p5 }
  0x16   : > { %p829_p0 = pnand %p827_p13, %p817_p12 }
  0x18   : > { %p830_p3 = pneg %p829_p0 }
  0x1a   : > { %p837_p4 = pnand %p836_p6, %p830_p3 }
  0x1c   : > { %840 = shalt.err (!%p837_p4)
}
  0x1d   : > { %s956_s30 = smov 128   ;;  %s957_s4 = smov 8  }
  0x1e   : > { %724 = dma.hbm_to_vmem [thread:$0]  (!%p1056_p11), %s1241_s1, 256, %s155_s26, [#allocation6], %s956_s30, %s956_s30, %s957_s4  }
  0x1f   : > { %p34_p6 = scmp.ge.s32.totalorder %s32_s28, 2  ;;  %s39_s7 = sadd.s32 1, %s941_s14 }
  0x20   : > { %p46_p4 = scmp.ne.s32.totalorder %s941_s14, %s937_s13  ;;  %p47_p9 = scmp.eq.s32.totalorder %s953_s17, 0 }
  0x21   : > { %s1263_s28 = smov (%p34_p6, %s32_s28), 0  ;;  %p734_p0 = scmp.lt.s32.totalorder %s953_s17, 2 }
  0x22   : > { %p1074_p12 = por %p47_p9, %p46_p4  ;;  %p1080_p13 = por %p1031_p2, %p46_p4 }
  0x23   : > { %s36_s10 = ssub.s32 %s949_s16, %s1263_s28  ;;  %s171_s11 = sand.u32 1, %s941_s14  }
  0x24   : > { %p37_p11 = scmp.eq.s32.totalorder %s36_s10, 0  ;;  %s692_s18 = sshll.u32 %s171_s11, 5 }
  0x25   : > { %s710_s25 = sshll.u32 %s949_s16, 9  ;;  %s175_s30 = scalar_lea.vmem [#allocation2], %s692_s18 }
  0x26   : > { %s1089_s19 = scalar_select %p37_p11, %s941_s14, %s39_s7  }
  0x27   : > { %s181_s29 = scalar_lea.hbm %s1240_s0, %s710_s25  ;;  %s182_s4 = sshll.u32 %s175_s30, 4  ;;  %s183_s4 = int_to_ptr.vmem [resolvable:$true] %s182_s4 }
  0x28   : > { %p1097_p2 = pnand %p734_p0, %p1074_p12  ;;  %s172_s5 = scalar_lea.sflag [#allocation3], %s171_s11 }
  0x29   : > { %s854_s6 = scalar_lea.vmem %s183_s4, 512  ;;  %s958_s7 = smov [#allocation2]  }
  0x2a   : > { %p843_p3 = pneg %p1097_p2  ;;  %p855_p5 = scmp.ne.s32.totalorder %s183_s4, %s854_s6 }
  0x2b   : > { %s859_s10 = sshll.u32 %s958_s7, 4  ;;  %s860_s10 = int_to_ptr.vmem [resolvable:$false] %s859_s10 }
  0x2c   : > { %p857_p7 = pnand %p855_p5, %p843_p3  ;;  %s861_s25 = scalar_lea.vmem %s860_s10, 1024 }
  0x2d   : > { %p862_p4 = scmp.lt.s32.totalorder %s183_s4, %s860_s10  ;;  %p863_p9 = scmp.lt.s32.totalorder %s861_s25, %s854_s6 }
  0x2e   : > { %p858_p6 = pneg %p857_p7 }
  0x2f   : > { %p864_p11 = por %p863_p9, %p862_p4 }
  0x31   : > { %p865_p10 = pnand %p864_p11, %p858_p6 }
  0x33   : > { %868 = shalt.err (!%p865_p10)
}
  0x34   : > { %s959_s8 = smov 256   ;;  %s960_s18 = smov 16  }
  0x35   : > { %728 = dma.hbm_to_vmem [thread:$0]  (!%p1097_p2), %s181_s29, 512, %s183_s4, %s172_s5, %s959_s8, %s959_s8, %s960_s18  }
  0x36   : > { %194 = sbr.rel (%p1047_p8) target bundleno = 775 (0x307), region = 32  ;;  %s1108_s11 = sand.u32 (!%p1047_p8), 1, %s937_s13  }
  0x37   : > { %s696_s26 = sshll.u32 (!%p1047_p8), %s1108_s11, 5  ;;  %s197_s27 = scalar_lea.sflag (!%p1047_p8), [#allocation3], %s1108_s11 }
  0x38   : > { %s1112_s30 = scalar_lea.vmem (!%p1047_p8), [#allocation2], %s696_s26  ;;  %p1254_p12 = scmp.ne.s32.totalorder (!%p1047_p8), %s1247_s22, 0 }
  0x3b   : > { %920 = dma.done.wait (%p1254_p12), %s197_s27, 512  }
  0x3c   : > { %922 = vsyncadd (%p1254_p12), %s197_s27, 4294966784 }
  0x3d   : > { %924 = dma.done.wait (%p1027_p1), [#allocation6], 256  }
  0x3e   : > { %926 = vsyncadd (%p1027_p1), [#allocation6], 4294967040  ;;  %v1123_v0 = vld [vmem:[%s1112_s30 + $0x4] ss:$16 sps:$4 sm:$0xff]   ;;  %v1126_v1 = vld [vmem:[%s1112_s30] ss:$16 sps:$4 sm:$0xff]  }
  0x3f   : > { %s961_s24 = smov 91   ;;  %v804_v2 = vld [vmem:[%s1112_s30 + $0x8] ss:$16 sps:$4 sm:$0xff]   ;;  %v962_v3 = vmov 0   ;;  %s963_s20 = smov 92   ;;  %vm391_vm0 = vcmask 130048  }
  0x40   : > { %352 = vrot.lane.b32.xlu0 %v1123_v0, %s961_s24  ;;  %438 = vmatprep.subr.bf16.mxu1 %v962_v3  ;;  %v806_v4 = vld [vmem:[%s1112_s30 + $0xc] ss:$16 sps:$4 sm:$0xff]   ;;  %s964_s22 = smov 108   ;;  %s965_s29 = smov 109   ;;  %vm358_vm1 = vcmask 744448   ;;  %vm343_vm2 = vcmask 752640  }
  0x41   : > { %350 = vrot.lane.b32.xlu1 %v1126_v1, %s961_s24  ;;  %s966_s4 = smov 110   ;;  %s967_s21 = smov 126   ;;  %v810_v5 = vld [vmem:[#allocation5 + $0x4] ss:$8 sps:$4 sm:$0xff]   ;;  %vm328_vm3 = vcmask 883712   ;;  %vm313_vm4 = vcmask 891904  }
  0x42   : > { %s968_s5 = smov 127   ;;  %705 = vmatprep.mubr.msk.bf16.mxu0 %vm391_vm0, %v810_v5  ;;  %706 = vmatprep.mubr.msk.bf16.mxu1 %vm391_vm0, %v810_v5  ;;  %s969_s6 = smov 90   ;;  %vm298_vm5 = vcmask 900096   ;;  %vm283_vm6 = vcmask 1031168   ;;  %vm268_vm7 = vcmask 1039360   ;;  %vm373_vm8 = vcmask 736256  }
  0x43   : > { %v807_v58 = vld [vmem:[%s1112_s30 + $0x8] ss:$16 sps:$4 sm:$0xff]   ;;  %v479_v5 = vld [vmem:[%s1242_s2] sm:$0x7]  ;;  %s711_s25 = smul.u32 48, %s1108_s11 }
  0x44   : > { %354 = vrot.lane.b32.xlu0 %v804_v2, %s961_s24  ;;  %v808_v61 = vld [vmem:[#allocation5] ss:$8 sps:$4 sm:$0xff]   ;;  %s712_s8 = smul.u32 768, %s945_s15 }
  0x45   : > { %337 = vrot.lane.b32.xlu1 %v1123_v0, %s963_s20  ;;  %s226_s18 = scalar_lea.vmem [#allocation7], %s711_s25 }
  0x46   : > { %s591_s26 = sshll.u32 %s226_s18, 4  ;;  %s1190_s30 = scalar_lea.hbm %s1243_s3, %s712_s8  ;;  %s1192_s26 = int_to_ptr.vmem [resolvable:$true] %s591_s26 }
  0x48   : > { %339 = vrot.lane.b32.xlu0 %v804_v2, %s963_s20 }
  0x49   : > { %335 = vrot.lane.b32.xlu1 %v1126_v1, %s963_s20 }
  0x4c   : > { %356 = vrot.lane.b32.xlu0 %v806_v4, %s961_s24  ;;  %s575_s24 = scalar_lea.sflag [#allocation4], %s1108_s11 }
  0x4d   : > { %322 = vrot.lane.b32.xlu1 %v1123_v0, %s964_s22 }
  0x50   : > { %324 = vrot.lane.b32.xlu0 %v804_v2, %s964_s22 }
  0x51   : > { %320 = vrot.lane.b32.xlu1 %v1126_v1, %s964_s22 }
  0x54   : > { %341 = vrot.lane.b32.xlu0 %v806_v4, %s963_s20  ;;  %s869_s20 = scalar_lea.vmem %s1192_s26, 768 }
  0x55   : > { %307 = vrot.lane.b32.xlu1 %v1123_v0, %s965_s29  ;;  %p870_p1 = scmp.ne.s32.totalorder %s1192_s26, %s869_s20 }
  0x57   : > { %p871_p8 = pnand %p870_p1, %p1080_p13 }
  0x58   : > { %309 = vrot.lane.b32.xlu0 %v804_v2, %s965_s29 }
  0x59   : > { %305 = vrot.lane.b32.xlu1 %v1126_v1, %s965_s29  ;;  %p872_p10 = pneg %p871_p8 }
  0x5c   : > { %326 = vrot.lane.b32.xlu0 %v806_v4, %s964_s22  ;;  %s970_s22 = smov [#allocation7]  }
  0x5d   : > { %292 = vrot.lane.b32.xlu1 %v1123_v0, %s966_s4 }
  0x60   : > { %294 = vrot.lane.b32.xlu0 %v804_v2, %s966_s4 }
  0x61   : > { %290 = vrot.lane.b32.xlu1 %v1126_v1, %s966_s4 }
  0x64   : > { %311 = vrot.lane.b32.xlu0 %v806_v4, %s965_s29  ;;  %s873_s29 = sshll.u32 %s970_s22, 4  ;;  %s874_s29 = int_to_ptr.vmem [resolvable:$false] %s873_s29 }
  0x65   : > { %277 = vrot.lane.b32.xlu1 %v1123_v0, %s967_s21  ;;  %p876_p0 = scmp.lt.s32.totalorder %s1192_s26, %s874_s29 }
  0x68   : > { %279 = vrot.lane.b32.xlu0 %v804_v2, %s967_s21 }
  0x69   : > { %275 = vrot.lane.b32.xlu1 %v1126_v1, %s967_s21 }
  0x6c   : > { %296 = vrot.lane.b32.xlu0 %v806_v4, %s966_s4  ;;  %s875_s4 = scalar_lea.vmem %s874_s29, 1536 }
  0x6d   : > { %262 = vrot.lane.b32.xlu1 %v1123_v0, %s968_s5  ;;  %p877_p2 = scmp.lt.s32.totalorder %s875_s4, %s869_s20 }
  0x6f   : > { %p878_p3 = por %p877_p2, %p876_p0 }
  0x70   : > { %264 = vrot.lane.b32.xlu0 %v804_v2, %s968_s5 }
  0x71   : > { %260 = vrot.lane.b32.xlu1 %v1126_v1, %s968_s5  ;;  %p879_p5 = pnand %p878_p3, %p872_p10 }
  0x74   : > { %281 = vrot.lane.b32.xlu0 %v806_v4, %s967_s21 }
  0x75   : > { %266 = vrot.lane.b32.xlu1 %v806_v4, %s968_s5 }
  0x78   : > { %367 = vrot.lane.b32.xlu0 %v1123_v0, %s969_s6 }
  0x79   : > { %369 = vrot.lane.b32.xlu1 %v804_v2, %s969_s6 }
  0x7c   : > { %365 = vrot.lane.b32.xlu0 %v1126_v1, %s969_s6 }
  0x7d   : > { %371 = vrot.lane.b32.xlu1 %v806_v4, %s969_s6 }
  0xb2   : > { %v353_v6 = vpop.permute.xlu0 %352 }
  0xb3   : > { %v351_v7 = vpop.permute.xlu1 %350 }
  0xb4   : > { %v359_v11 = vsel %vm358_vm1, %v351_v7, %v353_v6 }
  0xb6   : > { %v355_v8 = vpop.permute.xlu0 %354 }
  0xb7   : > { %v338_v9 = vpop.permute.xlu1 %337  ;;  %v360_v10 = vsel %vm358_vm1, %v353_v6, %v355_v8 }
  0xb8   : > { %395 = vmatprep.subr.bf16.mxu0 %v360_v10 }
  0xb9   : > { %396 = vmatpush1.bf16.msra.mxu0 %v359_v11 }
  0xba   : > { %v340_v12 = vpop.permute.xlu0 %339 }
  0xbb   : > { %v336_v13 = vpop.permute.xlu1 %335  ;;  %v345_v14 = vsel %vm343_vm2, %v338_v9, %v340_v12 }
  0xbc   : > { %397 = vmatprep.subr.bf16.mxu0 %v345_v14  ;;  %v344_v15 = vsel %vm343_vm2, %v336_v13, %v338_v9 }
  0xbd   : > { %398 = vmatpush1.bf16.msra.mxu0 %v344_v15 }
  0xbe   : > { %v357_v16 = vpop.permute.xlu0 %356 }
  0xbf   : > { %v323_v17 = vpop.permute.xlu1 %322  ;;  %v361_v18 = vsel %vm358_vm1, %v355_v8, %v357_v16 }
  0xc0   : > { %439 = vmatpush1.bf16.msra.mxu1 %v361_v18 }
  0xc1   : > { %440 = vmatprep.subr.bf16.mxu1 %v962_v3 }
  0xc2   : > { %v325_v19 = vpop.permute.xlu0 %324 }
  0xc3   : > { %v321_v20 = vpop.permute.xlu1 %320  ;;  %v330_v21 = vsel %vm328_vm3, %v323_v17, %v325_v19 }
  0xc4   : > { %399 = vmatprep.subr.bf16.mxu0 %v330_v21  ;;  %v329_v22 = vsel %vm328_vm3, %v321_v20, %v323_v17 }
  0xc5   : > { %400 = vmatpush1.bf16.msra.mxu0 %v329_v22 }
  0xc6   : > { %v342_v23 = vpop.permute.xlu0 %341 }
  0xc7   : > { %v308_v24 = vpop.permute.xlu1 %307  ;;  %v346_v25 = vsel %vm343_vm2, %v340_v12, %v342_v23 }
  0xc8   : > { %441 = vmatpush1.bf16.msra.mxu1 %v346_v25 }
  0xc9   : > { %442 = vmatprep.subr.bf16.mxu1 %v962_v3 }
  0xca   : > { %v310_v26 = vpop.permute.xlu0 %309 }
  0xcb   : > { %v306_v27 = vpop.permute.xlu1 %305  ;;  %v315_v28 = vsel %vm313_vm4, %v308_v24, %v310_v26 }
  0xcc   : > { %401 = vmatprep.subr.bf16.mxu0 %v315_v28  ;;  %v314_v29 = vsel %vm313_vm4, %v306_v27, %v308_v24 }
  0xcd   : > { %402 = vmatpush1.bf16.msra.mxu0 %v314_v29 }
  0xce   : > { %v327_v30 = vpop.permute.xlu0 %326 }
  0xcf   : > { %v293_v31 = vpop.permute.xlu1 %292  ;;  %v331_v32 = vsel %vm328_vm3, %v325_v19, %v327_v30 }
  0xd0   : > { %443 = vmatpush1.bf16.msra.mxu1 %v331_v32 }
  0xd1   : > { %444 = vmatprep.subr.bf16.mxu1 %v962_v3 }
  0xd2   : > { %v295_v33 = vpop.permute.xlu0 %294 }
  0xd3   : > { %v291_v34 = vpop.permute.xlu1 %290  ;;  %v300_v35 = vsel %vm298_vm5, %v293_v31, %v295_v33 }
  0xd4   : > { %403 = vmatprep.subr.bf16.mxu0 %v300_v35  ;;  %v299_v36 = vsel %vm298_vm5, %v291_v34, %v293_v31 }
  0xd5   : > { %404 = vmatpush1.bf16.msra.mxu0 %v299_v36 }
  0xd6   : > { %v312_v37 = vpop.permute.xlu0 %311 }
  0xd7   : > { %v278_v38 = vpop.permute.xlu1 %277  ;;  %v316_v39 = vsel %vm313_vm4, %v310_v26, %v312_v37 }
  0xd8   : > { %445 = vmatpush1.bf16.msra.mxu1 %v316_v39 }
  0xd9   : > { %446 = vmatprep.subr.bf16.mxu1 %v962_v3 }
  0xda   : > { %v280_v40 = vpop.permute.xlu0 %279 }
  0xdb   : > { %v276_v41 = vpop.permute.xlu1 %275  ;;  %v285_v42 = vsel %vm283_vm6, %v278_v38, %v280_v40 }
  0xdc   : > { %405 = vmatprep.subr.bf16.mxu0 %v285_v42  ;;  %v284_v43 = vsel %vm283_vm6, %v276_v41, %v278_v38 }
  0xdd   : > { %406 = vmatpush1.bf16.msra.mxu0 %v284_v43 }
  0xde   : > { %v297_v44 = vpop.permute.xlu0 %296 }
  0xdf   : > { %v263_v45 = vpop.permute.xlu1 %262  ;;  %v301_v46 = vsel %vm298_vm5, %v295_v33, %v297_v44 }
  0xe0   : > { %447 = vmatpush1.bf16.msra.mxu1 %v301_v46 }
  0xe1   : > { %448 = vmatprep.subr.bf16.mxu1 %v962_v3 }
  0xe2   : > { %v265_v47 = vpop.permute.xlu0 %264 }
  0xe3   : > { %v261_v48 = vpop.permute.xlu1 %260  ;;  %v270_v49 = vsel %vm268_vm7, %v263_v45, %v265_v47 }
  0xe4   : > { %407 = vmatprep.subr.bf16.mxu0 %v270_v49  ;;  %v269_v50 = vsel %vm268_vm7, %v261_v48, %v263_v45 }
  0xe5   : > { %408 = vmatpush1.bf16.msra.mxu0 %v269_v50 }
  0xe6   : > { %v282_v51 = vpop.permute.xlu0 %281  ;;  %409 = vmatprep.subr.bf16.mxu0 %v1123_v0  ;;  %v481_v0 = vlaneseq }
  0xe7   : > { %v267_v52 = vpop.permute.xlu1 %266  ;;  %v286_v53 = vsel %vm283_vm6, %v280_v40, %v282_v51 }
  0xe8   : > { %449 = vmatpush1.bf16.msra.mxu1 %v286_v53  ;;  %v271_v56 = vsel %vm268_vm7, %v265_v47, %v267_v52 }
  0xe9   : > { %410 = vmatpush1.bf16.msra.mxu0 %v1126_v1  ;;  %450 = vmatprep.subr.bf16.mxu1 %v962_v3  ;;  %v482_v1 = vshrl.u32 %v481_v0, 7 }
  0xea   : > { %v368_v54 = vpop.permute.xlu0 %367 }
  0xeb   : > { %v370_v55 = vpop.permute.xlu1 %369  ;;  %v483_v2 = vsub.s32 0, %v482_v1  ;;  %v487_v4 = vsub.s32 1, %v482_v1  ;;  %v491_v6 = vsub.s32 2, %v482_v1 }
  0xec   : > { %v375_v57 = vsel %vm373_vm8, %v368_v54, %v370_v55  ;;  %451 = vmatpush1.bf16.msra.mxu1 %v271_v56 }
  0xed   : > { %425 = vmatprep.subr.bf16.mxu0 %v375_v57  ;;  %452 = vmatprep.subr.bf16.mxu1 %v962_v3  ;;  %v484_v7 = vrot.slane %v479_v5, %v483_v2  ;;  %v488_v8 = vrot.slane %v479_v5, %v487_v4  ;;  %v492_v10 = vrot.slane %v479_v5, %v491_v6 }
  0xee   : > { %v366_v59 = vpop.permute.xlu0 %365 }
  0xef   : > { %v374_v60 = vsel %vm373_vm8, %v366_v59, %v368_v54  ;;  %v372_v62 = vpop.permute.xlu1 %371 }
  0xf0   : > { %426 = vmatpush2.bf16.msra.mxu0 %v374_v60  ;;  %453 = vmatpush1.bf16.msra.mxu1 %v807_v58  ;;  %v376_v63 = vsel %vm373_vm8, %v370_v55, %v372_v62 }
  0xf1   : > { %468 = vmatprep.subr.bf16.mxu1 %v962_v3 }
  0xf3   : > { %428 = vmatmul.mubr.bf16.vlgmr.msra.gmra.mxu0 %v808_v61 }
  0xf4   : > { %469 = vmatpush2.bf16.msra.mxu1 %v376_v63 }
  0xf7   : > { %471 = vmatmul.mubr.bf16.vlgmr.msra.gmra.mxu1 %v808_v61 }
 0x1b3   : > { %v429_v9 = vpop.f32.mrf.mxu0 }
 0x1b4   : > { %v496_v3 = vmul.f32 %v484_v7, %v429_v9 }
 0x1b5   : > { %v431_v11 = vpop.f32.mrf.mxu0 }
 0x1b6   : > { %v497_v12 = vmul.f32 %v488_v8, %v431_v11 }
 0x1b7   : > { %v433_v13 = vpop.f32.mrf.mxu0  ;;  %v472_v14 = vpop.f32.mrf.mxu1 }
 0x1b8   : > { %v498_v15 = vmul.f32 %v492_v10, %v472_v14  ;;  %v502_v16 = vadd.f32 %v497_v12, %v496_v3  ;;  %v499_v19 = vmul.f32 %v484_v7, %v433_v13 }
 0x1b9   : > { %v435_v17 = vpop.f32.mrf.mxu0  ;;  %v474_v18 = vpop.f32.mrf.mxu1 }
 0x1ba   : > { %v500_v20 = vmul.f32 %v488_v8, %v435_v17  ;;  %v503_v21 = vadd.f32 %v502_v16, %v498_v15 }
 0x1bb   : > { %v475_v22 = vpop.f32.mrf.mxu1 }
 0x1bc   : > { %v506_v23 = vadd.f32 %v500_v20, %v499_v19  ;;  %v501_v24 = vmul.f32 %v492_v10, %v475_v22  ;;  %504 = vadd.xlane.f32.xlu0 %v503_v21 }
 0x1bd   : > { %v477_v25 = vpop.f32.mrf.mxu1 }
 0x1be   : > { %v507_v26 = vadd.f32 %v506_v23, %v501_v24 }
 0x1c0   : > { %508 = vadd.xlane.f32.xlu1 %v507_v26 }
 0x245   : > { %v505_v27 = vpop.xlane.xlu0 %504 }
 0x246   : > { %v510_v28 = vmul.f32 0.00390625, %v505_v27 }
 0x248   : > { %v512_v29 = vsub.f32 %v429_v9, %v510_v28  ;;  %v513_v30 = vsub.f32 %v431_v11, %v510_v28  ;;  %v514_v31 = vsub.f32 %v472_v14, %v510_v28 }
 0x249   : > { %v509_v32 = vpop.xlane.xlu1 %508 }
 0x24a   : > { %v511_v33 = vmul.f32 0.00390625, %v509_v32  ;;  %v518_v34 = vmul.f32 %v512_v29, %v484_v7  ;;  %v519_v35 = vmul.f32 %v513_v30, %v488_v8  ;;  %v520_v36 = vmul.f32 %v514_v31, %v492_v10 }
 0x24c   : > { %v515_v37 = vsub.f32 %v433_v13, %v511_v33  ;;  %v516_v38 = vsub.f32 %v435_v17, %v511_v33  ;;  %v517_v39 = vsub.f32 %v475_v22, %v511_v33  ;;  %v524_v40 = vmul.f32 %v518_v34, %v518_v34 }
 0x24d   : > { %v525_v41 = vmul.f32 %v519_v35, %v519_v35  ;;  %v526_v45 = vmul.f32 %v520_v36, %v520_v36 }
 0x24e   : > { %v521_v42 = vmul.f32 %v515_v37, %v484_v7  ;;  %v522_v43 = vmul.f32 %v516_v38, %v488_v8  ;;  %v523_v44 = vmul.f32 %v517_v39, %v492_v10 }
 0x24f   : > { %v530_v46 = vadd.f32 %v525_v41, %v524_v40 }
 0x250   : > { %v527_v47 = vmul.f32 %v521_v42, %v521_v42  ;;  %v528_v48 = vmul.f32 %v522_v43, %v522_v43  ;;  %v529_v50 = vmul.f32 %v523_v44, %v523_v44 }
 0x251   : > { %v531_v49 = vadd.f32 %v530_v46, %v526_v45 }
 0x252   : > { %v534_v51 = vadd.f32 %v528_v48, %v527_v47 }
 0x253   : > { %532 = vadd.xlane.f32.xlu0 %v531_v49 }
 0x254   : > { %v535_v52 = vadd.f32 %v534_v51, %v529_v50 }
 0x257   : > { %536 = vadd.xlane.f32.xlu0 %v535_v52 }
 0x2dc   : > { %v533_v53 = vpop.xlane.xlu0 %532 }
 0x2dd   : > { %v538_v54 = vmul.f32 0.00390625, %v533_v53 }
 0x2df   : > { %v540_v55 = vadd.f32 1e-05, %v538_v54 }
 0x2e0   : > { %v537_v56 = vpop.xlane.xlu0 %536 }
 0x2e1   : > { %811 = vrsqrt.f32 %v540_v55  ;;  %v539_v57 = vmul.f32 0.00390625, %v537_v56 }
 0x2e3   : > { %v541_v58 = vadd.f32 1e-05, %v539_v57 }
 0x2e5   : > { %813 = vrsqrt.f32 %v541_v58 }
 0x2ee   : > { %v812_v59 = vpop.eup %811 }
 0x2ef   : > { %v544_v60 = vmul.f32 %v812_v59, %v512_v29  ;;  %v545_v61 = vmul.f32 %v812_v59, %v513_v30  ;;  %v546_v62 = vmul.f32 %v812_v59, %v514_v31 }
 0x2f1   : > { %vm550_vm9 = vcmp.ge.f32.partialorder %v544_v60, 0.0  ;;  %vm551_vm10 = vcmp.ge.f32.partialorder %v545_v61, 0.0  ;;  %vm552_vm11 = vcmp.ge.f32.partialorder %v546_v62, 0.0  ;;  %v556_v63 = vmul.f32 0.01, %v544_v60 }
 0x2f2   : > { %v814_v0 = vpop.eup %813  ;;  %v557_v1 = vmul.f32 0.01, %v545_v61  ;;  %v558_v2 = vmul.f32 0.01, %v546_v62 }
 0x2f3   : > { %v562_v4 = vsel %vm550_vm9, %v544_v60, %v556_v63  ;;  %v547_v5 = vmul.f32 %v814_v0, %v515_v37  ;;  %v548_v6 = vmul.f32 %v814_v0, %v516_v38  ;;  %v549_v7 = vmul.f32 %v814_v0, %v517_v39 }
 0x2f4   : > { %v563_v8 = vsel %vm551_vm10, %v545_v61, %v557_v1  ;;  %v564_v9 = vsel %vm552_vm11, %v546_v62, %v558_v2  ;;  %568 = vst [vmem:[%s226_s18] sm:$0xff] %v562_v4 }
 0x2f5   : > { %vm553_vm12 = vcmp.ge.f32.partialorder %v547_v5, 0.0  ;;  %vm554_vm13 = vcmp.ge.f32.partialorder %v548_v6, 0.0  ;;  %vm555_vm14 = vcmp.ge.f32.partialorder %v549_v7, 0.0  ;;  %v559_v10 = vmul.f32 0.01, %v547_v5  ;;  %569 = vst [vmem:[%s226_s18 + $0x8] sm:$0xff] %v563_v8 }
 0x2f6   : > { %570 = vst [vmem:[%s226_s18 + $0x10] sm:$0xff] %v564_v9  ;;  %v560_v11 = vmul.f32 0.01, %v548_v6  ;;  %v561_v3 = vmul.f32 0.01, %v549_v7 }
 0x2f7   : > { %v565_v12 = vsel %vm553_vm12, %v547_v5, %v559_v10 }
 0x2f8   : > { %v566_v13 = vsel %vm554_vm13, %v548_v6, %v560_v11  ;;  %v567_v14 = vsel %vm555_vm14, %v549_v7, %v561_v3  ;;  %571 = vst [vmem:[%s226_s18 + $0x18] sm:$0xff] %v565_v12 }
 0x2f9   : > { %572 = vst [vmem:[%s226_s18 + $0x20] sm:$0xff] %v566_v13  ;;  %573 = vst [vmem:[%s226_s18 + $0x28] sm:$0xff] %v567_v14 }
 0x2fa   : > { %882 = shalt.err (!%p879_p5)
}
 0x2fb   : > { %s883_s21 = scalar_lea.hbm %s1190_s30, 768  ;;  %s887_s7 = scalar_lea.hbm %s1243_s3, 1536 }
 0x2fc   : > { %p884_p7 = scmp.ne.s32.totalorder %s1190_s30, %s883_s21  ;;  %p888_p9 = scmp.lt.s32.totalorder %s1190_s30, %s1243_s3 }
 0x2fd   : > { %p889_p11 = scmp.lt.s32.totalorder %s887_s7, %s883_s21 }
 0x2fe   : > { %p885_p6 = pnand %p884_p7, %p1080_p13 }
 0x2ff   : > { %p890_p12 = por %p889_p11, %p888_p9 }
 0x300   : > { %p886_p4 = pneg %p885_p6 }
 0x302   : > { %p891_p1 = pnand %p890_p12, %p886_p4 }
 0x304   : > { %894 = shalt.err (!%p891_p1)
}
 0x305   : > { %s971_s8 = smov 384   ;;  %s972_s18 = smov 24  }
 0x306   : > { %719 = dma.vmem_to_hbm [thread:$0]  (%p1080_p13), %s1192_s26, 768, %s1190_s30, %s575_s24, %s971_s8, %s971_s8, %s972_s18  }
 0x307 PF: > { %s606_s15 = sand.u32 1, %s933_s12   ;;  %p1255_p8 = scmp.ne.s32.totalorder %s1248_s23, 0 }
 0x308   : > { %p1256_p10 = scmp.ge.s32.totalorder %s953_s17, 2  ;;  %s607_s27 = scalar_lea.sflag [#allocation4], %s606_s15 }
 0x30a   : > { %p730_p0 = pnand %p1256_p10, %p1255_p8 }
 0x30c   : > { %p731_p2 = pneg %p730_p0 }
 0x30e   : > { %928 = dma.done.wait (%p731_p2), %s607_s27, 768  }
 0x30f   : > { %930 = vsyncadd (%p731_p2), %s607_s27, 4294966528  ;;  %s20_s17 = sadd.s32 1, %s953_s17   ;;  %s1257_s12 = smov %s937_s13 }
 0x310   : > { %p17_p3 = scmp.ge.s32.totalorder %s20_s17, 4   ;;  %s1258_s13 = smov %s941_s14 }
 0x311   : > { %s1259_s14 = smov %s1089_s19  ;;  %s1260_s15 = smov %s949_s16 }
 0x312   : > { %s1261_s16 = smov %s1263_s28  ;;  %19 = sbr.rel (!%p17_p3) target bundleno = 7 (0x7), region = 82 }
 0x317   :  { %612 = vsyncpa [#allocation3], 1 }
 0x318   :  { %614 = vsyncpa [#allocation3 + $0x1], 1 }
 0x319   :  { %615 = vsyncpa [#allocation6], 1 }
 0x31a   :  { %616 = vsyncpa [#allocation4], 1 }
 0x31b   :  { %618 = vsyncpa [#allocation4 + $0x1], 1 }

</bundles_post_ra>
